<compile_context>
chip_gen: v7x
topology: tpu7x:2x2x1
jax: 0.10.0
libtpu: 0.0.40
codegen_flags: <defaults>
</compile_context>

<pallas_src>
import jax
import jax.numpy as jnp
from jax.experimental import pallas as pl
from jax.experimental.pallas import tpu as pltpu  # noqa: F401  (TPU backend)


def _round_up(n, m):
    return ((n + m - 1) // m) * m


def gilr_kernel(x_ref, h_old_ref, w_ref, b_ref, out_ref):
    """x:(Bp,Dp) h_old:(Bp,Hp) w:(Dp,2*Hp) b:(1,2*Hp) out:(Bp,Hp)."""
    H = out_ref.shape[1]  # static (padded) hidden size; split lands on lane tile

    x = x_ref[...]
    h_old = h_old_ref[...].astype(jnp.float32)

    # One fused MXU matmul for both gates, f32 accumulate.
    pre = jnp.dot(x, w_ref[...], preferred_element_type=jnp.float32) + b_ref[...]

    g = jax.nn.sigmoid(pre[:, :H])   # gate
    i = jnp.tanh(pre[:, H:])         # candidate

    # h_new = g*h_old + (1-g)*i  ==  i + g*(h_old - i)
    out_ref[...] = (i + g * (h_old - i)).astype(out_ref.dtype)


def gilr_cell(h_old, x_new, wg, bg, wi, bi):
    """GILR cell forward.

    h_old : (B, H)        old hidden state
    x_new : (B, D)        new input
    wg, wi: (H, D)        nn.Linear weights (PyTorch (out, in) layout)
    bg, bi: (H,)          nn.Linear biases
    returns (B, H) new hidden state.
    """
    B, H = h_old.shape
    D = x_new.shape[1]
    dtype = h_old.dtype

    # Lane/sublane-dense padded sizes (f32: sublane=8, lane=128).
    Bp = _round_up(max(B, 8), 8)
    Hp = _round_up(max(H, 128), 128)
    Dp = _round_up(max(D, 128), 128)

    # Fuse + transpose weights into a single (Dp, 2*Hp) operand; the g-part
    # occupies lanes [0, Hp) and the i-part lanes [Hp, 2*Hp) so the in-kernel
    # split at Hp is a clean lane-tile boundary.  Zero padding is inert for the
    # matmul (extra contraction rows are zero) and the padded output columns /
    # rows are discarded below.
    def pad2(a, r, c):
        return jnp.pad(a, ((0, r - a.shape[0]), (0, c - a.shape[1])))

    wg_t = pad2(wg.T.astype(dtype), Dp, Hp)          # (Dp, Hp)
    wi_t = pad2(wi.T.astype(dtype), Dp, Hp)          # (Dp, Hp)
    w_fused = jnp.concatenate([wg_t, wi_t], axis=1)  # (Dp, 2*Hp)

    bg_p = jnp.pad(bg.astype(jnp.float32), (0, Hp - H))
    bi_p = jnp.pad(bi.astype(jnp.float32), (0, Hp - H))
    b_fused = jnp.concatenate([bg_p, bi_p])[None, :]  # (1, 2*Hp)

    x_p = pad2(x_new.astype(dtype), Bp, Dp)           # (Bp, Dp)
    h_p = pad2(h_old, Bp, Hp)                         # (Bp, Hp)

    full = lambda shape: pl.BlockSpec(shape, lambda: (0,) * len(shape))

    out_p = pl.pallas_call(
        gilr_kernel,
        out_shape=jax.ShapeDtypeStruct((Bp, Hp), dtype),
        in_specs=[
            full((Bp, Dp)),       # x
            full((Bp, Hp)),       # h_old
            full((Dp, 2 * Hp)),   # fused [Wg^T | Wi^T]
            full((1, 2 * Hp)),    # fused [bg | bi]
        ],
        out_specs=full((Bp, Hp)),
    )(x_p, h_p, w_fused, b_fused)

    return out_p[:B, :H]


def reference_gilr(h_old, x_new, wg, bg, wi, bi):
    g = jax.nn.sigmoid(x_new @ wg.T + bg)
    i = jnp.tanh(x_new @ wi.T + bi)
    return g * h_old + (1.0 - g) * i


if __name__ == "__main__":
    # Small shapes consistent with the module's forward.
    batch = 2
    input_size = 16
    lstm_size = 32

    key = jax.random.PRNGKey(0)
    k_h, k_x, k_wg, k_bg, k_wi, k_bi = jax.random.split(key, 6)

    # nn.Linear-style init: U(-1/sqrt(in), 1/sqrt(in)), PyTorch (out, in) layout.
    bound = 1.0 / (input_size ** 0.5)
    wg = jax.random.uniform(k_wg, (lstm_size, input_size), jnp.float32, -bound, bound)
    bg = jax.random.uniform(k_bg, (lstm_size,), jnp.float32, -bound, bound)
    wi = jax.random.uniform(k_wi, (lstm_size, input_size), jnp.float32, -bound, bound)
    bi = jax.random.uniform(k_bi, (lstm_size,), jnp.float32, -bound, bound)

    h_old = jax.random.normal(k_h, (batch, lstm_size), jnp.float32)
    x_new = jax.random.normal(k_x, (batch, input_size), jnp.float32)

    h_new = gilr_cell(h_old, x_new, wg, bg, wi, bi)
    h_new = jax.block_until_ready(h_new)

    ref = reference_gilr(h_old, x_new, wg, bg, wi, bi)
    assert h_new.shape == (batch, lstm_size)
    assert jnp.allclose(h_new, ref, atol=1e-5, rtol=1e-5), "mismatch vs reference"

    print("KERNEL_OK")
</pallas_src>

<mosaic_0001>
module attributes {stable_mosaic.version = 11 : i64} {
  func.func @gilr_kernel(%arg0: memref<8x128xf32, #tpu.memory_space<vmem>>, %arg1: memref<8x128xf32, #tpu.memory_space<vmem>>, %arg2: memref<128x256xf32, #tpu.memory_space<vmem>>, %arg3: memref<1x256xf32, #tpu.memory_space<vmem>>, %arg4: memref<8x128xf32, #tpu.memory_space<vmem>>) attributes {dimension_semantics = [], scalar_prefetch = 0 : i64, scratch_operands = 0 : i64, tpu.core_type = #tpu.core_type<tc>} {
    %c0 = arith.constant 0 : index
    %c0_0 = arith.constant 0 : index
    %0 = vector.load %arg0[%c0, %c0_0] : memref<8x128xf32, #tpu.memory_space<vmem>>, vector<8x128xf32>
    %c0_1 = arith.constant 0 : index
    %c0_2 = arith.constant 0 : index
    %1 = vector.load %arg1[%c0_1, %c0_2] : memref<8x128xf32, #tpu.memory_space<vmem>>, vector<8x128xf32>
    %c0_3 = arith.constant 0 : index
    %c0_4 = arith.constant 0 : index
    %2 = vector.load %arg2[%c0_3, %c0_4] : memref<128x256xf32, #tpu.memory_space<vmem>>, vector<128x256xf32>
    %cst = arith.constant dense<0.000000e+00> : vector<8x256xf32>
    %3 = tpu.matmul %0, %2, %cst {dimension_numbers = #tpu.dot_dimension_numbers<[1], [0], [0], [1], [0, 0, 1, 1], [], []>} : vector<8x128xf32>, vector<128x256xf32>, vector<8x256xf32> -> vector<8x256xf32>
    %c0_5 = arith.constant 0 : index
    %c0_6 = arith.constant 0 : index
    %4 = vector.load %arg3[%c0_5, %c0_6] : memref<1x256xf32, #tpu.memory_space<vmem>>, vector<1x256xf32>
    %5 = vector.broadcast %4 : vector<1x256xf32> to vector<8x256xf32>
    %6 = arith.addf %3, %5 : vector<8x256xf32>
    %7 = vector.extract_strided_slice %6 {offsets = [0, 0], sizes = [8, 128], strides = [1, 1]} : vector<8x256xf32> to vector<8x128xf32>
    %8 = arith.negf %7 : vector<8x128xf32>
    %9 = math.exp %8 : vector<8x128xf32>
    %cst_7 = arith.constant 1.000000e+00 : f32
    %10 = vector.broadcast %cst_7 : f32 to vector<8x128xf32>
    %11 = arith.addf %10, %9 : vector<8x128xf32>
    %12 = arith.divf %10, %11 : vector<8x128xf32>
    %13 = vector.extract_strided_slice %6 {offsets = [0, 128], sizes = [8, 128], strides = [1, 1]} : vector<8x256xf32> to vector<8x128xf32>
    %14 = math.tanh %13 : vector<8x128xf32>
    %15 = arith.subf %1, %14 : vector<8x128xf32>
    %16 = arith.mulf %12, %15 : vector<8x128xf32>
    %17 = arith.addf %14, %16 : vector<8x128xf32>
    %c0_8 = arith.constant 0 : index
    %c0_9 = arith.constant 0 : index
    %18 = vector.load %arg4[%c0_8, %c0_9] : memref<8x128xf32, #tpu.memory_space<vmem>>, vector<8x128xf32>
    tpu.vector_store %arg4[%c0_8, %c0_9], %17 {strides = array<i32>} : memref<8x128xf32, #tpu.memory_space<vmem>>, vector<8x128xf32>,
    return
  }
}

</mosaic_0001>

<bundles_post_ra>
// kernel: tpu_custom_call.1
= control target key start
LH: loop header
LB: loop body
LE: loop exit
PB: predicated region body
PF: predicated region fallthrough
CT: control target
= control target key end

     0   :  { %9 = vsyncpa [#allocation3], 0  ;;  %s422_s0 = inlined_call_operand.hbm [shape: f32[8,128], index: 0, kind: input, shape index: {}]   ;;  %s423_s1 = inlined_call_operand.hbm [shape: f32[8,128], index: 1, kind: input, shape index: {}]   ;;  %s424_s2 = inlined_call_operand.hbm [shape: f32[128,256], index: 2, kind: input, shape index: {}]   ;;  %s425_s3 = inlined_call_operand.vmem [shape: f32[1,256], index: 3, kind: input, shape index: {}]   ;;  %s426_s4 = inlined_call_operand.hbm [shape: f32[8,128], index: 4, kind: output, shape index: {}]  }
   0x1   :  { %10 = vsyncpa [#allocation6], 0 }
   0x2   :  { %11 = vsyncpa [#allocation4], 0  ;;  %s339_s15 = smov [#allocation5]   ;;  %s340_s17 = smov [#allocation2]  }
   0x3   :  { %s28_s16 = sshll.u32 %s339_s15, 4  ;;  %s18_s18 = sshll.u32 %s340_s17, 4  ;;  %s29_s16 = int_to_ptr.vmem [resolvable:$true] %s28_s16  ;;  %s19_s18 = int_to_ptr.vmem [resolvable:$true] %s18_s18 }
   0x4   :  { %s245_s21 = scalar_lea.hbm %s423_s1, 128 }
   0x5   :  { %p246_p0 = scmp.ne.s32.totalorder %s423_s1, %s245_s21  ;;  %p249_p1 = scmp.lt.u32.totalorder %s245_s21, %s423_s1 }
   0x7   :  { %p251_p2 = pnand %p249_p1, %p246_p0 }
   0x9   :  { %254 = shalt.err (!%p251_p2)
}
   0xa   :  { %s255_s26 = scalar_lea.vmem %s29_s16, 128  ;;  %p260_p4 = scmp.lt.s32.totalorder %s29_s16, %s29_s16 }
   0xb   :  { %p256_p3 = scmp.ne.s32.totalorder %s29_s16, %s255_s26  ;;  %p261_p5 = scmp.lt.s32.totalorder %s255_s26, %s255_s26 }
   0xd   :  { %p262_p6 = por %p261_p5, %p260_p4 }
   0xf   :  { %p263_p7 = pnand %p262_p6, %p256_p3 }
  0x11   :  { %266 = shalt.err (!%p263_p7)
}
  0x12   :  { %31 = dma.hbm_to_vmem [thread:$0]  %s423_s1, 128, %s29_s16, [#allocation6]  }
  0x13   :  { %s267_s5 = scalar_lea.hbm %s422_s0, 128 }
  0x14   :  { %p268_p8 = scmp.ne.s32.totalorder %s422_s0, %s267_s5  ;;  %p271_p9 = scmp.lt.u32.totalorder %s267_s5, %s422_s0 }
  0x16   :  { %p273_p10 = pnand %p271_p9, %p268_p8 }
  0x18   :  { %276 = shalt.err (!%p273_p10)
}
  0x19   :  { %s277_s10 = scalar_lea.vmem %s19_s18, 128  ;;  %p282_p12 = scmp.lt.s32.totalorder %s19_s18, %s19_s18 }
  0x1a   :  { %p278_p11 = scmp.ne.s32.totalorder %s19_s18, %s277_s10  ;;  %p283_p13 = scmp.lt.s32.totalorder %s277_s10, %s277_s10 }
  0x1c   :  { %p284_p0 = por %p283_p13, %p282_p12 }
  0x1e   :  { %p285_p1 = pnand %p284_p0, %p278_p11 }
  0x20   :  { %288 = shalt.err (!%p285_p1)
}
  0x21   :  { %21 = dma.hbm_to_vmem [thread:$0]  %s422_s0, 128, %s19_s18, [#allocation3]  }
  0x22   :  { %s341_s12 = smov [#allocation7]   ;;  %s289_s16 = scalar_lea.hbm %s424_s2, 4096 }
  0x23   :  { %s37_s13 = sshll.u32 %s341_s12, 4  ;;  %p290_p2 = scmp.ne.s32.totalorder %s424_s2, %s289_s16  ;;  %s38_s13 = int_to_ptr.vmem [resolvable:$true] %s37_s13 }
  0x24   :  { %p293_p3 = scmp.lt.u32.totalorder %s289_s16, %s424_s2 }
  0x26   :  { %p295_p4 = pnand %p293_p3, %p290_p2 }
  0x28   :  { %298 = shalt.err (!%p295_p4)
}
  0x29   :  { %s299_s22 = scalar_lea.vmem %s38_s13, 4096  ;;  %p304_p6 = scmp.lt.s32.totalorder %s38_s13, %s38_s13 }
  0x2a   :  { %p300_p5 = scmp.ne.s32.totalorder %s38_s13, %s299_s22  ;;  %p305_p7 = scmp.lt.s32.totalorder %s299_s22, %s299_s22 }
  0x2c   :  { %p306_p8 = por %p305_p7, %p304_p6 }
  0x2e   :  { %p307_p9 = pnand %p306_p8, %p300_p5 }
  0x30   :  { %310 = shalt.err (!%p307_p9)
}
  0x31   :  { %s342_s0 = smov 256   ;;  %s343_s18 = smov 16  }
  0x32   :  { %43 = dma.hbm_to_vmem [thread:$0]  %s424_s2, 4096, %s38_s13, [#allocation6], %s342_s0, %s342_s0, %s343_s18  }
  0x33   :  { %333 = dma.done.wait [#allocation3], 128  }
  0x34   :  { %334 = vsyncadd [#allocation3], 4294967168 }
  0x35   :  { %335 = dma.done.wait [#allocation6], 4224  }
  0x36   :  { %336 = vsyncadd [#allocation6], 4294963072  ;;  %v344_v0 = vmov 0.0   ;;  %v58_v1 = vld [vmem:[#allocation7 + $0x8] sm:$0xff]  ;;  %v60_v2 = vld [vmem:[#allocation7 + $0x18] sm:$0xff]  ;;  %v91_v50 = vlaneseq  ;;  %s345_s26 = smov [#allocation8]  }
  0x37   :  { %165 = vmatprep.mubr.f32.mxu0 %v344_v0  ;;  %v57_v3 = vld [vmem:[#allocation7] sm:$0xff]  ;;  %v200_v4 = vpack.c.bf16 %v60_v2, %v58_v1  ;;  %v59_v5 = vld [vmem:[#allocation7 + $0x10] sm:$0xff]  ;;  %v62_v6 = vld [vmem:[#allocation7 + $0x28] sm:$0xff]  ;;  %s189_s27 = sshll.u32 %s345_s26, 4  ;;  %s190_s27 = int_to_ptr.vmem [resolvable:$true] %s189_s27 }
  0x38   :  { %v64_v7 = vld [vmem:[#allocation7 + $0x38] sm:$0xff]  ;;  %v202_v8 = vpack.c.bf16 %v59_v5, %v57_v3  ;;  %v61_v10 = vld [vmem:[#allocation7 + $0x20] sm:$0xff]  ;;  %v63_v11 = vld [vmem:[#allocation7 + $0x30] sm:$0xff]  ;;  %v92_v51 = vshrl.u32 %v91_v50, 7  ;;  %p316_p11 = scmp.lt.s32.totalorder %s190_s27, %s190_s27 }
  0x39   :  { %v204_v9 = vpack.c.bf16 %v64_v7, %v62_v6  ;;  %v66_v12 = vld [vmem:[#allocation7 + $0x48] sm:$0xff]  ;;  %201 = vmatprep.subr.bf16.mxu0 %v200_v4  ;;  %v68_v13 = vld [vmem:[#allocation7 + $0x58] sm:$0xff]  ;;  %v206_v14 = vpack.c.bf16 %v63_v11, %v61_v10  ;;  %v65_v16 = vld [vmem:[#allocation7 + $0x40] sm:$0xff] }
  0x3a   :  { %203 = vmatpush1.bf16.msra.mxu0 %v202_v8  ;;  %v208_v15 = vpack.c.bf16 %v68_v13, %v66_v12  ;;  %v67_v17 = vld [vmem:[#allocation7 + $0x50] sm:$0xff]  ;;  %v70_v18 = vld [vmem:[#allocation7 + $0x68] sm:$0xff]  ;;  %v72_v19 = vld [vmem:[#allocation7 + $0x78] sm:$0xff]  ;;  %v93_v52 = vsub.s32 0, %v92_v51  ;;  %v97_v58 = vsub.s32 1, %v92_v51 }
  0x3b   :  { %205 = vmatprep.subr.bf16.mxu0 %v204_v9  ;;  %v210_v20 = vpack.c.bf16 %v67_v17, %v65_v16  ;;  %v212_v21 = vpack.c.bf16 %v72_v19, %v70_v18  ;;  %v69_v22 = vld [vmem:[#allocation7 + $0x60] sm:$0xff]  ;;  %v71_v23 = vld [vmem:[#allocation7 + $0x70] sm:$0xff]  ;;  %v74_v24 = vld [vmem:[#allocation7 + $0x88] sm:$0xff] }
  0x3c   :  { %v76_v25 = vld [vmem:[#allocation7 + $0x98] sm:$0xff]  ;;  %v214_v26 = vpack.c.bf16 %v71_v23, %v69_v22  ;;  %v73_v28 = vld [vmem:[#allocation7 + $0x80] sm:$0xff]  ;;  %v75_v29 = vld [vmem:[#allocation7 + $0x90] sm:$0xff] }
  0x3d   :  { %v216_v27 = vpack.c.bf16 %v76_v25, %v74_v24  ;;  %v78_v30 = vld [vmem:[#allocation7 + $0xa8] sm:$0xff]  ;;  %v80_v31 = vld [vmem:[#allocation7 + $0xb8] sm:$0xff]  ;;  %v218_v32 = vpack.c.bf16 %v75_v29, %v73_v28  ;;  %v77_v34 = vld [vmem:[#allocation7 + $0xa0] sm:$0xff] }
  0x3e   :  { %207 = vmatpush1.bf16.msra.mxu0 %v206_v14  ;;  %v220_v33 = vpack.c.bf16 %v80_v31, %v78_v30  ;;  %v79_v35 = vld [vmem:[#allocation7 + $0xb0] sm:$0xff]  ;;  %v82_v36 = vld [vmem:[#allocation7 + $0xc8] sm:$0xff]  ;;  %v84_v37 = vld [vmem:[#allocation7 + $0xd8] sm:$0xff] }
  0x3f   :  { %209 = vmatprep.subr.bf16.mxu0 %v208_v15  ;;  %v222_v38 = vpack.c.bf16 %v79_v35, %v77_v34  ;;  %v224_v39 = vpack.c.bf16 %v84_v37, %v82_v36  ;;  %v81_v40 = vld [vmem:[#allocation7 + $0xc0] sm:$0xff]  ;;  %v83_v41 = vld [vmem:[#allocation7 + $0xd0] sm:$0xff]  ;;  %v86_v42 = vld [vmem:[#allocation7 + $0xe8] sm:$0xff] }
  0x40   :  { %v88_v43 = vld [vmem:[#allocation7 + $0xf8] sm:$0xff]  ;;  %v226_v44 = vpack.c.bf16 %v83_v41, %v81_v40  ;;  %v85_v46 = vld [vmem:[#allocation7 + $0xe0] sm:$0xff]  ;;  %v87_v47 = vld [vmem:[#allocation7 + $0xf0] sm:$0xff] }
  0x41   :  { %v228_v45 = vpack.c.bf16 %v88_v43, %v86_v42  ;;  %v230_v48 = vpack.c.bf16 %v87_v47, %v85_v46  ;;  %v55_v49 = vld [vmem:[#allocation2] sm:$0xff]  ;;  %v56_v1 = vld [vmem:[#allocation5] sm:$0xff] }
  0x42   :  { %211 = vmatpush1.bf16.msra.mxu0 %v210_v20  ;;  %v89_v53 = vld [vmem:[%s425_s3] sm:$0x3]  ;;  %s311_s3 = scalar_lea.vmem %s190_s27, 128 }
  0x43   :  { %213 = vmatprep.subr.bf16.mxu0 %v212_v21  ;;  %v94_v54 = vrot.slane %v89_v53, %v93_v52  ;;  %v98_v60 = vrot.slane %v89_v53, %v97_v58  ;;  %p312_p10 = scmp.ne.s32.totalorder %s190_s27, %s311_s3  ;;  %p317_p12 = scmp.lt.s32.totalorder %s311_s3, %s311_s3 }
  0x45   :  { %p318_p13 = por %p317_p12, %p316_p11 }
  0x46   :  { %215 = vmatpush1.bf16.msra.mxu0 %v214_v26 }
  0x47   :  { %217 = vmatprep.subr.bf16.mxu0 %v216_v27  ;;  %p319_p0 = pnand %p318_p13, %p312_p10 }
  0x4a   :  { %219 = vmatpush1.bf16.msra.mxu0 %v218_v32 }
  0x4b   :  { %221 = vmatprep.subr.bf16.mxu0 %v220_v33 }
  0x4e   :  { %223 = vmatpush1.bf16.msra.mxu0 %v222_v38 }
  0x4f   :  { %225 = vmatprep.subr.bf16.mxu0 %v224_v39 }
  0x52   :  { %227 = vmatpush1.bf16.msra.mxu0 %v226_v44 }
  0x53   :  { %229 = vmatprep.subr.bf16.mxu0 %v228_v45 }
  0x56   :  { %231 = vmatpush1.bf16.msra.mxu0 %v230_v48 }
  0x59   :  { %166 = vmatmul.mubr.f32.vlgmr.msra.gmra.mrb[0].mxu0 %v55_v49 }
 0x12c   :  { %v167_v55 = vpop.f32.mrb[0].mxu0 }
 0x12d   :  { %v168_v56 = vadd.f32 %v167_v55, %v94_v54  ;;  %v169_v57 = vpop.f32.mrb[1].mxu0 }
 0x12e   :  { %v170_v61 = vadd.f32 %v169_v57, %v98_v60 }
 0x12f   :  { %v199_v59 = vmul.f32 -1.442695, %v168_v56 }
 0x131   :  { %239 = vpow2.f32 %v199_v59 }
 0x132   :  { %241 = vtanh.f32 %v170_v61 }
 0x13b   :  { %v240_v62 = vpop.eup %239 }
 0x13c   :  { %v175_v63 = vadd.f32 1.0, %v240_v62  ;;  %v242_v0 = vpop.eup %241 }
 0x13d   :  { %v179_v2 = vsub.f32 %v56_v1, %v242_v0 }
 0x13e   :  { %243 = vrcp.f32 %v175_v63 }
 0x148   :  { %v244_v3 = vpop.eup %243 }
 0x149   :  { %v180_v4 = vmul.f32 %v244_v3, %v179_v2 }
 0x14b   :  { %v181_v5 = vadd.f32 %v242_v0, %v180_v4 }
 0x14d   :  { %182 = vst [vmem:[#allocation8] sm:$0xff] %v181_v5 }
 0x14e   :  { %322 = shalt.err (!%p319_p0)
}
 0x14f   :  { %s323_s30 = scalar_lea.hbm %s426_s4, 128 }
 0x150   :  { %p324_p1 = scmp.ne.s32.totalorder %s426_s4, %s323_s30  ;;  %p327_p2 = scmp.lt.u32.totalorder %s323_s30, %s426_s4 }
 0x152   :  { %p329_p3 = pnand %p327_p2, %p324_p1 }
 0x154   :  { %332 = shalt.err (!%p329_p3)
}
 0x155   :  { %192 = dma.vmem_to_hbm [thread:$0]  %s190_s27, 128, %s426_s4, [#allocation4]  }
 0x156   :  { %337 = dma.done.wait [#allocation4], 128  }
 0x157   :  { %338 = vsyncadd [#allocation4], 4294967168 }
 0x158   :  { %196 = vsyncpa [#allocation3], 1 }
 0x159   :  { %197 = vsyncpa [#allocation6], 1 }
 0x15a   :  { %198 = vsyncpa [#allocation4], 1 }

</bundles_post_ra>
